<compile_context>
chip_gen: v5e
topology: v5e:2x2
jax: 0.10.0
libtpu: 0.0.40
codegen_flags: <defaults>
</compile_context>

<pallas_src>
import jax
import jax.numpy as jnp
from jax.experimental import pallas as pl
from jax.experimental.pallas import tpu as pltpu


def _round_up(x, m):
    return (x + m - 1) // m * m


def _make_prediction_kernel(C, S, two_d):
    """Kernel body for a given (C, S) and input layout.

    two_d=True : x_ref is (TB, C*S)  -- used when S % 128 == 0 (no C sublane pad)
    two_d=False: x_ref is (TB, C, S) -- fallback for ragged S
    Single lane-dense output: policy_ref is (TB, S_pad) laid out as
      [board policy (S) | pass_logit (col S) | value (col S+1) | zeros].
    """
    inv_s = 1.0 / float(S)

    def kernel(x_ref, wv_ref, wp_ref, sc_ref, policy_ref):
        TB = policy_ref.shape[0]
        S_pad = policy_ref.shape[1]

        bv = sc_ref[0]          # value_conv bias
        wfc = sc_ref[1]         # value_fc weight (1,1)
        bfc = sc_ref[2]         # value_fc bias
        bp = sc_ref[3]          # policy_conv bias
        pass_logit = sc_ref[4]  # pass logit parameter

        # Channel contraction on the VPU as a short static loop (C is tiny).
        # NOTE: do NOT move this to the MXU even for large C — there are only
        # 1-2 output channels, so a matmul would occupy <=2/256 MXU columns;
        # the kernel is HBM-read-bound and this VPU work hides under DMA.
        pacc = jnp.zeros((TB, S), jnp.float32)
        vacc = jnp.zeros((TB, 1), jnp.float32)
        for c in range(C):
            if two_d:
                xs = x_ref[:, pl.ds(c * S, S)]     # lane-aligned channel slice
            else:
                xs = x_ref[:, c, :]
            xs = xs.astype(jnp.float32)            # bf16 latents -> f32 accumulate
            pacc = pacc + wp_ref[c] * xs                                      # policy 1x1 conv
            vacc = vacc + wv_ref[c] * jnp.sum(xs, axis=1, keepdims=True)      # value conv (pre-mean)

        # Value head: mean_s(sum_c w_c x) == sum_c w_c mean_s(x); then Linear(1,1).
        value = (vacc * inv_s + bv) * wfc + bfc    # (TB, 1)

        # Tail block covering the padded lanes: [pass_logit | value | zeros].
        T = S_pad - S
        col = jax.lax.broadcasted_iota(jnp.int32, (TB, T), 1)
        tail = jnp.where(col == 0, pass_logit, jnp.float32(0.0))
        tail = jnp.where(col == 1, value, tail)

        board = pacc + bp
        if two_d:
            # S and S_pad - S are multiples of 128 -> two unmasked lane-aligned
            # stores; no concatenated (TB, S_pad) temporary in vregs/VMEM.
            policy_ref[:, pl.ds(0, S)] = board
            policy_ref[:, pl.ds(S, T)] = tail
        else:
            policy_ref[...] = jnp.concatenate([board, tail], axis=1)

    return kernel


def _per_row_bytes(C, S, S_pad, two_d, x_itemsize):
    """Per-batch-row VMEM bytes of one input block + one output block (layout-padded)."""
    if two_d:
        x_row = C * S * x_itemsize                                   # C*S is a multiple of 128
    else:
        x_row = _round_up(C, 8) * _round_up(S, 128) * x_itemsize     # (C,S) tile padding
    out_row = S_pad * 4
    return x_row + out_row


def _pick_batch_tile(B, per_row_bytes, vmem_budget_bytes, min_grid_steps=4):
    """Largest batch tile whose double-buffered blocks fit the VMEM budget."""
    rows = vmem_budget_bytes // (2 * per_row_bytes)   # x2: double-buffered in/out blocks
    rows = max(8, (rows // 8) * 8)                    # multiple of 8 (f32 sublane tile)
    TB = B if B <= rows else rows
    # Keep >= min_grid_steps grid steps when the batch allows, so the batch
    # axis shards across both v7x TensorCores and the DMA pipeline overlaps.
    if B >= min_grid_steps * 8:
        cap = max(8, (B // min_grid_steps) // 8 * 8)
        TB = min(TB, cap)
    return TB


def prediction_network(latent_nchw, params, *, vmem_budget_bytes=24 << 20):
    """latent_nchw: (B, C, H, W) f32 or bf16. Returns (value (B,1), policy_logits (B, H*W+1))."""
    wv, bv, wfc, bfc, wp, bp, pass_logit = params
    B, C, H, W = latent_nchw.shape
    S = H * W
    S_pad = _round_up(S + 2, 128)        # board (S) + pass logit + packed value + zero pad
    two_d = (S % 128 == 0)

    if two_d:
        x = latent_nchw.reshape(B, C * S)   # free reshape; removes C->8 sublane padding
    else:
        x = latent_nchw.reshape(B, C, S)

    per_row = _per_row_bytes(C, S, S_pad, two_d, x.dtype.itemsize)
    TB = _pick_batch_tile(B, per_row, vmem_budget_bytes)
    grid = (pl.cdiv(B, TB),)
    tb_pad = _round_up(TB, 8)
    # Scoped VMEM: double-buffered x + policy blocks, plus slack for the tiny
    # SMEM params and internal scratch.  (<= ~32 MiB with the default budget,
    # safe for v7x's 64 MiB physical VMEM.)
    vmem_limit = int(2 * tb_pad * per_row) + (8 << 20)

    wv_s = wv.reshape(C).astype(jnp.float32)      # per-channel value-conv weights (SMEM)
    wp_s = wp.reshape(C).astype(jnp.float32)      # per-channel policy-conv weights (SMEM)
    scalars = jnp.concatenate([
        bv.reshape(-1), wfc.reshape(-1), bfc.reshape(-1),
        bp.reshape(-1), pass_logit.reshape(-1),
        jnp.zeros((3,), jnp.float32),
    ]).astype(jnp.float32)                         # (8,) packed SMEM scalars

    if two_d:
        x_spec = pl.BlockSpec((TB, C * S), lambda b: (b, 0))
    else:
        x_spec = pl.BlockSpec((TB, C, S), lambda b: (b, 0, 0))

    # NOTE: when B % TB != 0 the last grid step computes on Pallas-padded rows;
    # those results are discarded so correctness holds.

    policy_pad = pl.pallas_call(
        _make_prediction_kernel(C, S, two_d),
        out_shape=jax.ShapeDtypeStruct((B, S_pad), jnp.float32),
        grid=grid,
        in_specs=[
            x_spec,                                                  # latent tile
            pl.BlockSpec(memory_space=pltpu.MemorySpace.SMEM),       # wv (C,)
            pl.BlockSpec(memory_space=pltpu.MemorySpace.SMEM),       # wp (C,)
            pl.BlockSpec(memory_space=pltpu.MemorySpace.SMEM),       # packed scalars (8,)
        ],
        out_specs=pl.BlockSpec((TB, S_pad), lambda b: (b, 0)),
        compiler_params=pltpu.CompilerParams(
            dimension_semantics=("parallel",),     # batch axis -> megacore on v7x
            vmem_limit_bytes=vmem_limit),
    )(x, wv_s, wp_s, scalars)

    value = policy_pad[:, S + 1:S + 2]             # packed value scalar (col S+1)
    policy_logits = policy_pad[:, :S + 1]          # board policy + pass logit
    return value, policy_logits


def reference_forward(latent_nchw, params):
    """Pure-JAX reference matching the PyTorch module exactly."""
    wv, bv, wfc, bfc, wp, bp, pass_logit = params
    B = latent_nchw.shape[0]
    vmap = jnp.einsum('bchw,c->bhw', latent_nchw, wv[:, 0]) + bv[0, 0]
    value = vmap.mean(axis=(1, 2))[:, None]
    value = value * wfc[0, 0] + bfc[0, 0]
    pmap = jnp.einsum('bchw,c->bhw', latent_nchw, wp[:, 0]) + bp[0, 0]
    board = pmap.reshape(B, -1)
    pass_col = jnp.broadcast_to(pass_logit.reshape(1, 1), (B, 1))
    return value, jnp.concatenate([board, pass_col], axis=1)


def init_params(latent_dim, key):
    k1, k2 = jax.random.split(key, 2)
    wv = (jax.random.normal(k1, (latent_dim, 1), jnp.float32) * 0.1)  # value_conv weight
    bv = jnp.array([[0.05]], jnp.float32)                             # value_conv bias
    wfc = jnp.array([[1.3]], jnp.float32)                             # value_fc weight (1,1)
    bfc = jnp.array([[-0.2]], jnp.float32)                            # value_fc bias
    wp = (jax.random.normal(k2, (latent_dim, 1), jnp.float32) * 0.1)  # policy_conv weight
    bp = jnp.array([[0.02]], jnp.float32)                             # policy_conv bias
    pass_logit = jnp.zeros((1, 1), jnp.float32)                       # nn.Parameter(torch.zeros(1))
    return (wv, bv, wfc, bfc, wp, bp, pass_logit)


if __name__ == "__main__":
    B, C, H, W = 2, 4, 16, 16
    key = jax.random.PRNGKey(0)
    k_x, k_p = jax.random.split(key)
    latent = jax.random.normal(k_x, (B, C, H, W), jnp.float32)
    params = init_params(C, k_p)

    value, policy_logits = prediction_network(latent, params)
    jax.block_until_ready((value, policy_logits))

    ref_value, ref_policy = reference_forward(latent, params)
    assert value.shape == (B, 1)
    assert policy_logits.shape == (B, H * W + 1)
    assert jnp.allclose(value, ref_value, rtol=1e-5, atol=1e-5)
    assert jnp.allclose(policy_logits, ref_policy, rtol=1e-5, atol=1e-5)

    print("KERNEL_OK")
</pallas_src>

<mosaic_0001>
module attributes {stable_mosaic.version = 11 : i64} {
  func.func @kernel(%arg0: i32, %arg1: memref<2x1024xf32, #tpu.memory_space<vmem>>, %arg2: memref<4xf32, #tpu.memory_space<smem>>, %arg3: memref<4xf32, #tpu.memory_space<smem>>, %arg4: memref<8xf32, #tpu.memory_space<smem>>, %arg5: memref<2x384xf32, #tpu.memory_space<vmem>>) attributes {dimension_semantics = [#tpu.dimension_semantics<parallel>], iteration_bounds = array<i64: 1>, scalar_prefetch = 0 : i64, scratch_operands = 0 : i64, tpu.core_type = #tpu.core_type<tc>, window_params = [{transform_indices = @transform_0, window_bounds = array<i64: 2, 1024>}, {transform_indices = @transform_1, window_bounds = array<i64: 4>}, {transform_indices = @transform_2, window_bounds = array<i64: 4>}, {transform_indices = @transform_3, window_bounds = array<i64: 8>}, {transform_indices = @transform_4, window_bounds = array<i64: 2, 384>}]} {
    %c0 = arith.constant 0 : index
    %0 = memref.load %arg4[%c0] : memref<8xf32, #tpu.memory_space<smem>>
    %c1 = arith.constant 1 : index
    %1 = memref.load %arg4[%c1] : memref<8xf32, #tpu.memory_space<smem>>
    %c2 = arith.constant 2 : index
    %2 = memref.load %arg4[%c2] : memref<8xf32, #tpu.memory_space<smem>>
    %c3 = arith.constant 3 : index
    %3 = memref.load %arg4[%c3] : memref<8xf32, #tpu.memory_space<smem>>
    %c4 = arith.constant 4 : index
    %4 = memref.load %arg4[%c4] : memref<8xf32, #tpu.memory_space<smem>>
    %cst = arith.constant 0.000000e+00 : f32
    %5 = vector.broadcast %cst : f32 to vector<2x256xf32>
    %cst_0 = arith.constant 0.000000e+00 : f32
    %6 = vector.broadcast %cst_0 : f32 to vector<2x1xf32>
    %c0_1 = arith.constant 0 : index
    %c0_2 = arith.constant 0 : index
    %7 = vector.load %arg1[%c0_1, %c0_2] : memref<2x1024xf32, #tpu.memory_space<vmem>>, vector<2x256xf32>
    %c0_3 = arith.constant 0 : index
    %8 = memref.load %arg3[%c0_3] : memref<4xf32, #tpu.memory_space<smem>>
    %9 = vector.broadcast %8 : f32 to vector<2x256xf32>
    %10 = arith.mulf %9, %7 : vector<2x256xf32>
    %11 = arith.addf %5, %10 : vector<2x256xf32>
    %c0_4 = arith.constant 0 : index
    %12 = memref.load %arg2[%c0_4] : memref<4xf32, #tpu.memory_space<smem>>
    %cst_5 = arith.constant dense<0.000000e+00> : vector<2xf32>
    %13 = vector.multi_reduction <add>, %7, %cst_5 [1] : vector<2x256xf32> to vector<2xf32>
    %14 = vector.shape_cast %13 : vector<2xf32> to vector<2x1xf32>
    %15 = vector.broadcast %12 : f32 to vector<2x1xf32>
    %16 = arith.mulf %15, %14 : vector<2x1xf32>
    %17 = arith.addf %6, %16 : vector<2x1xf32>
    %c0_6 = arith.constant 0 : index
    %c256 = arith.constant 256 : index
    %18 = vector.load %arg1[%c0_6, %c256] : memref<2x1024xf32, #tpu.memory_space<vmem>>, vector<2x256xf32>
    %c1_7 = arith.constant 1 : index
    %19 = memref.load %arg3[%c1_7] : memref<4xf32, #tpu.memory_space<smem>>
    %20 = vector.broadcast %19 : f32 to vector<2x256xf32>
    %21 = arith.mulf %20, %18 : vector<2x256xf32>
    %22 = arith.addf %11, %21 : vector<2x256xf32>
    %c1_8 = arith.constant 1 : index
    %23 = memref.load %arg2[%c1_8] : memref<4xf32, #tpu.memory_space<smem>>
    %cst_9 = arith.constant dense<0.000000e+00> : vector<2xf32>
    %24 = vector.multi_reduction <add>, %18, %cst_9 [1] : vector<2x256xf32> to vector<2xf32>
    %25 = vector.shape_cast %24 : vector<2xf32> to vector<2x1xf32>
    %26 = vector.broadcast %23 : f32 to vector<2x1xf32>
    %27 = arith.mulf %26, %25 : vector<2x1xf32>
    %28 = arith.addf %17, %27 : vector<2x1xf32>
    %c0_10 = arith.constant 0 : index
    %c512 = arith.constant 512 : index
    %29 = vector.load %arg1[%c0_10, %c512] : memref<2x1024xf32, #tpu.memory_space<vmem>>, vector<2x256xf32>
    %c2_11 = arith.constant 2 : index
    %30 = memref.load %arg3[%c2_11] : memref<4xf32, #tpu.memory_space<smem>>
    %31 = vector.broadcast %30 : f32 to vector<2x256xf32>
    %32 = arith.mulf %31, %29 : vector<2x256xf32>
    %33 = arith.addf %22, %32 : vector<2x256xf32>
    %c2_12 = arith.constant 2 : index
    %34 = memref.load %arg2[%c2_12] : memref<4xf32, #tpu.memory_space<smem>>
    %cst_13 = arith.constant dense<0.000000e+00> : vector<2xf32>
    %35 = vector.multi_reduction <add>, %29, %cst_13 [1] : vector<2x256xf32> to vector<2xf32>
    %36 = vector.shape_cast %35 : vector<2xf32> to vector<2x1xf32>
    %37 = vector.broadcast %34 : f32 to vector<2x1xf32>
    %38 = arith.mulf %37, %36 : vector<2x1xf32>
    %39 = arith.addf %28, %38 : vector<2x1xf32>
    %c0_14 = arith.constant 0 : index
    %c768 = arith.constant 768 : index
    %40 = vector.load %arg1[%c0_14, %c768] : memref<2x1024xf32, #tpu.memory_space<vmem>>, vector<2x256xf32>
    %c3_15 = arith.constant 3 : index
    %41 = memref.load %arg3[%c3_15] : memref<4xf32, #tpu.memory_space<smem>>
    %42 = vector.broadcast %41 : f32 to vector<2x256xf32>
    %43 = arith.mulf %42, %40 : vector<2x256xf32>
    %44 = arith.addf %33, %43 : vector<2x256xf32>
    %c3_16 = arith.constant 3 : index
    %45 = memref.load %arg2[%c3_16] : memref<4xf32, #tpu.memory_space<smem>>
    %cst_17 = arith.constant dense<0.000000e+00> : vector<2xf32>
    %46 = vector.multi_reduction <add>, %40, %cst_17 [1] : vector<2x256xf32> to vector<2xf32>
    %47 = vector.shape_cast %46 : vector<2xf32> to vector<2x1xf32>
    %48 = vector.broadcast %45 : f32 to vector<2x1xf32>
    %49 = arith.mulf %48, %47 : vector<2x1xf32>
    %50 = arith.addf %39, %49 : vector<2x1xf32>
    %cst_18 = arith.constant 3.906250e-03 : f32
    %51 = vector.broadcast %cst_18 : f32 to vector<2x1xf32>
    %52 = arith.mulf %50, %51 : vector<2x1xf32>
    %53 = vector.broadcast %0 : f32 to vector<2x1xf32>
    %54 = arith.addf %52, %53 : vector<2x1xf32>
    %55 = vector.broadcast %1 : f32 to vector<2x1xf32>
    %56 = arith.mulf %54, %55 : vector<2x1xf32>
    %57 = vector.broadcast %2 : f32 to vector<2x1xf32>
    %58 = arith.addf %56, %57 : vector<2x1xf32>
    %59 = tpu.iota {dimensions = array<i32: 1>} : vector<2x128xi32>
    %c0_i32 = arith.constant 0 : i32
    %60 = vector.broadcast %c0_i32 : i32 to vector<2x128xi32>
    %61 = arith.cmpi eq, %59, %60 : vector<2x128xi32>
    %cst_19 = arith.constant 0.000000e+00 : f32
    %62 = vector.broadcast %4 : f32 to vector<2x128xf32>
    %63 = vector.broadcast %cst_19 : f32 to vector<2x128xf32>
    %64 = arith.select %61, %62, %63 : vector<2x128xi1>, vector<2x128xf32>
    %c1_i32 = arith.constant 1 : i32
    %65 = vector.broadcast %c1_i32 : i32 to vector<2x128xi32>
    %66 = arith.cmpi eq, %59, %65 : vector<2x128xi32>
    %67 = vector.shape_cast %58 : vector<2x1xf32> to vector<2x1xf32>
    %68 = vector.broadcast %67 : vector<2x1xf32> to vector<2x128xf32>
    %69 = arith.select %66, %68, %64 : vector<2x128xi1>, vector<2x128xf32>
    %70 = vector.broadcast %3 : f32 to vector<2x256xf32>
    %71 = arith.addf %44, %70 : vector<2x256xf32>
    %c0_20 = arith.constant 0 : index
    %c0_21 = arith.constant 0 : index
    %72 = vector.load %arg5[%c0_20, %c0_21] : memref<2x384xf32, #tpu.memory_space<vmem>>, vector<2x256xf32>
    tpu.vector_store %arg5[%c0_20, %c0_21], %71 {strides = array<i32>} : memref<2x384xf32, #tpu.memory_space<vmem>>, vector<2x256xf32>,
    %c0_22 = arith.constant 0 : index
    %c256_23 = arith.constant 256 : index
    %73 = vector.load %arg5[%c0_22, %c256_23] : memref<2x384xf32, #tpu.memory_space<vmem>>, vector<2x128xf32>
    tpu.vector_store %arg5[%c0_22, %c256_23], %69 {strides = array<i32>} : memref<2x384xf32, #tpu.memory_space<vmem>>, vector<2x128xf32>,
    return
  }
  func.func @transform_0(%arg0: i32) -> (i32, i32) {
    %c0_i32 = arith.constant 0 : i32
    %c0_i32_0 = arith.constant 0 : i32
    return %arg0, %c0_i32 : i32, i32
  }
  func.func @transform_1(%arg0: i32) -> i32 {
    %c0_i32 = arith.constant 0 : i32
    %c0_i32_0 = arith.constant 0 : i32
    return %c0_i32 : i32
  }
  func.func @transform_2(%arg0: i32) -> i32 {
    %c0_i32 = arith.constant 0 : i32
    %c0_i32_0 = arith.constant 0 : i32
    return %c0_i32 : i32
  }
  func.func @transform_3(%arg0: i32) -> i32 {
    %c0_i32 = arith.constant 0 : i32
    %c0_i32_0 = arith.constant 0 : i32
    return %c0_i32 : i32
  }
  func.func @transform_4(%arg0: i32) -> (i32, i32) {
    %c0_i32 = arith.constant 0 : i32
    %c0_i32_0 = arith.constant 0 : i32
    return %arg0, %c0_i32 : i32, i32
  }
}

</mosaic_0001>

<bundles_post_ra>
// kernel: tpu_custom_call.1
= control target key start
LH: loop header
LB: loop body
LE: loop exit
PB: predicated region body
PF: predicated region fallthrough
CT: control target
= control target key end

     0   :  { %9 = vsyncpa [#allocation3], 0  ;;  %s355_s0 = inlined_call_operand.hbm [shape: f32[2,1024], index: 0, kind: input, shape index: {}]   ;;  %s356_s1 = inlined_call_operand.hbm [shape: f32[4], index: 1, kind: input, shape index: {}]   ;;  %s357_s2 = inlined_call_operand.vmem [shape: f32[4], index: 2, kind: input, shape index: {}]   ;;  %s358_s3 = inlined_call_operand.vmem [shape: f32[8], index: 3, kind: input, shape index: {}]   ;;  %s359_s4 = inlined_call_operand.hbm [shape: f32[2,384], index: 4, kind: output, shape index: {}]  }
   0x1   :  { %10 = vsyncpa [#allocation5], 0 }
   0x2   :  { %11 = vsyncpa [#allocation6], 0 }
   0x3   :  { %12 = vsyncpa [#allocation10], 0 }
   0x4   :  { %13 = vsyncpa [#allocation4], 0  ;;  %s19_s17 = sshll.u32 %s355_s0, 4  ;;  %s302_s18 = smov [#allocation2]   ;;  %s20_s17 = int_to_ptr.hbm [resolvable:$true] %s19_s17 }
   0x5   :  { %s21_s19 = sshll.u32 %s302_s18, 4  ;;  %s30_s22 = sshll.u32 %s356_s1, 4  ;;  %s22_s19 = int_to_ptr.vmem [resolvable:$true] %s21_s19  ;;  %s31_s22 = int_to_ptr.hbm [resolvable:$true] %s30_s22 }
   0x6   :  { %24 = dma.hbm_to_vmem [thread:$0]  %s20_s17, 256, %s22_s19, [#allocation3]  }
   0x7   :  { %s303_s23 = smov [#allocation7]   ;;  %s39_s26 = sshll.u32 %s357_s2, 4  ;;  %s40_s26 = int_to_ptr.vmem [resolvable:$true] %s39_s26 }
   0x8   :  { %33 = dma.hbm_to_smem %s31_s22, 16, %s303_s23, [#allocation5]  }
   0x9   :  { %s48_s0 = sshll.u32 %s358_s3, 4  ;;  %s304_s29 = smov [#allocation8]   ;;  %s49_s0 = int_to_ptr.vmem [resolvable:$true] %s48_s0 }
   0xa   :  { %42 = dma.vmem_to_smem %s40_s26, 16, %s304_s29, [#allocation6]  }
   0xb   :  { %s305_s30 = smov [#allocation9]  }
   0xc   :  { %51 = dma.vmem_to_smem %s49_s0, 16, %s305_s30, [#allocation10]  }
   0xd   :  { %292 = dma.done.wait [#allocation3], 256  }
   0xe   :  { %293 = vsyncadd [#allocation3], 4294967040 }
   0xf   :  { %294 = dma.done.wait [#allocation5], 16  }
  0x10   :  { %295 = vsyncadd [#allocation5], 4294967280 }
  0x11   :  { %296 = dma.done.wait [#allocation6], 16  }
  0x12   :  { %297 = vsyncadd [#allocation6], 4294967280 }
  0x13   :  { %298 = dma.done.wait [#allocation10], 16  }
  0x14   :  { %299 = vsyncadd [#allocation10], 4294967280 }
  0x15   :  { %68 = sfence }
  0x16   :  { %v74_v0 = vld [vmem:[#allocation2] sm:$0xf]  ;;  %vm86_vm0 = vcmask 1041408   ;;  %v95_v1 = vld [vmem:[#allocation2 + $0x4] sm:$0xf]  ;;  %s75_s1 = sld [smem:[#allocation8]]  ;;  %v162_v48 = vlaneseq }
  0x17   :  { %81 = vst [vmem:[#allocation1] ss:$4 sm:$0xff] %v74_v0  ;;  %v115_v7 = vld [vmem:[#allocation2 + $0x8] sm:$0xf]  ;;  %v135_v13 = vld [vmem:[#allocation2 + $0xc] sm:$0xf] }
  0x18   :  { %s197_s2 = sld [smem:[#allocation8 + $0x1]]  ;;  %v163_v53 = vand.u32 127, %v162_v48  ;;  %s306_s15 = smov [#allocation11]  }
  0x19   :  { %s199_s3 = sld [smem:[#allocation8 + $0x2]]  ;;  %s178_s16 = sshll.u32 %s306_s15, 4  ;;  %s179_s16 = int_to_ptr.vmem [resolvable:$true] %s178_s16 }
  0x1a   :  { %s201_s5 = sld [smem:[#allocation8 + $0x3]]  ;;  %vm164_vm1 = vcmp.eq.s32.totalorder %v163_v53, 0  ;;  %s180_s19 = sshll.u32 %s359_s4, 4  ;;  %vm167_vm2 = vcmp.eq.s32.totalorder %v163_v53, 1  ;;  %s181_s19 = int_to_ptr.hbm [resolvable:$true] %s180_s19 }
  0x1b   :  { %s195_s6 = sld [smem:[#allocation9 + $0x3]] }
  0x1c   :  { %v76_v24 = vstv %s75_s1  ;;  %s79_s7 = sld [smem:[#allocation7]] }
  0x1d   :  { %v77_v26 = vmul.f32 %v76_v24, %v74_v0  ;;  %s198_s8 = sld [smem:[#allocation7 + $0x1]] }
  0x1e   :  { %v82_v2 = vld.sshfl [vmem:[#allocation1] sm:$0xff pattern:$0x73625140]  ;;  %v83_v3 = vld.sshfl [vmem:[#allocation1 + $0x8] sm:$0xff pattern:$0x73625140]  ;;  %v97_v25 = vstv %s197_s2 }
  0x1f   :  { %v87_v4 = vsel %vm86_vm0, %v82_v2, 0.0  ;;  %v88_v5 = vsel %vm86_vm0, %v83_v3, 0.0  ;;  %102 = vst [vmem:[#allocation1] ss:$4 sm:$0xff] %v95_v1  ;;  %v98_v27 = vmul.f32 %v97_v25, %v95_v1  ;;  %v117_v28 = vstv %s199_s3  ;;  %s200_s9 = sld [smem:[#allocation7 + $0x2]] }
  0x20   :  { %v89_v6 = vadd.f32 %v88_v5, %v87_v4  ;;  %v118_v30 = vmul.f32 %v117_v28, %v115_v7  ;;  %v137_v31 = vstv %s201_s5  ;;  %s202_s10 = sld [smem:[#allocation7 + $0x3]] }
  0x21   :  { %v99_v29 = vadd.f32 %v98_v27, %v77_v26  ;;  %v138_v33 = vmul.f32 %v137_v31, %v135_v13  ;;  %v169_v35 = vstv %s195_s6  ;;  %s69_s11 = sld [smem:[#allocation9]] }
  0x22   :  { %90 = vadd.xlane.f32.xlu0 %v89_v6  ;;  %v92_v38 = vstv %s79_s7  ;;  %s193_s12 = sld [smem:[#allocation9 + $0x1]] }
  0x23   :  { %v119_v32 = vadd.f32 %v118_v30, %v99_v29  ;;  %v112_v39 = vstv %s198_s8  ;;  %s196_s13 = sld [smem:[#allocation9 + $0x4]] }
  0x24   :  { %s194_s14 = sld [smem:[#allocation9 + $0x2]] }
  0x25   :  { %v139_v34 = vadd.f32 %v138_v33, %v119_v32  ;;  %v132_v42 = vstv %s200_s9 }
  0x26   :  { %v103_v8 = vld.sshfl [vmem:[#allocation1] sm:$0xff pattern:$0x73625140]  ;;  %v104_v9 = vld.sshfl [vmem:[#allocation1 + $0x8] sm:$0xff pattern:$0x73625140]  ;;  %v152_v46 = vstv %s202_s10 }
  0x27   :  { %v107_v10 = vsel %vm86_vm0, %v103_v8, 0.0  ;;  %v108_v11 = vsel %vm86_vm0, %v104_v9, 0.0  ;;  %122 = vst [vmem:[#allocation1] ss:$4 sm:$0xff] %v115_v7  ;;  %v170_v36 = vadd.f32 %v169_v35, %v139_v34  ;;  %v156_v54 = vstv %s69_s11 }
  0x28   :  { %v109_v12 = vadd.f32 %v108_v11, %v107_v10  ;;  %v158_v56 = vstv %s193_s12 }
  0x29   :  { %171 = vst [vmem:[#allocation11] sm:$0xf] %v170_v36  ;;  %v165_v58 = vstv %s196_s13 }
  0x2a   :  { %110 = vadd.xlane.f32.xlu0 %v109_v12  ;;  %v160_v59 = vstv %s194_s14  ;;  %v166_v61 = vsel %vm164_vm1, %v165_v58, 0.0 }
  0x2e   :  { %v123_v14 = vld.sshfl [vmem:[#allocation1] sm:$0xff pattern:$0x73625140]  ;;  %v124_v15 = vld.sshfl [vmem:[#allocation1 + $0x8] sm:$0xff pattern:$0x73625140] }
  0x2f   :  { %v127_v16 = vsel %vm86_vm0, %v123_v14, 0.0  ;;  %v128_v17 = vsel %vm86_vm0, %v124_v15, 0.0  ;;  %142 = vst [vmem:[#allocation1] ss:$4 sm:$0xff] %v135_v13 }
  0x30   :  { %v129_v18 = vadd.f32 %v128_v17, %v127_v16 }
  0x32   :  { %130 = vadd.xlane.f32.xlu1 %v129_v18 }
  0x36   :  { %v143_v19 = vld.sshfl [vmem:[#allocation1] sm:$0xff pattern:$0x73625140]  ;;  %v144_v20 = vld.sshfl [vmem:[#allocation1 + $0x8] sm:$0xff pattern:$0x73625140] }
  0x37   :  { %v147_v21 = vsel %vm86_vm0, %v143_v19, 0.0  ;;  %v148_v22 = vsel %vm86_vm0, %v144_v20, 0.0 }
  0x38   :  { %v149_v23 = vadd.f32 %v148_v22, %v147_v21 }
  0x3a   :  { %150 = vadd.xlane.f32.xlu1 %v149_v23 }
  0x95   :  { %v91_v37 = vpop.xlane.xlu0 %90 }
  0x96   :  { %v93_v43 = vmul.f32 %v92_v38, %v91_v37 }
  0x9d   :  { %v111_v40 = vpop.xlane.xlu0 %110 }
  0x9e   :  { %v113_v44 = vmul.f32 %v112_v39, %v111_v40 }
  0xa0   :  { %v114_v47 = vadd.f32 %v113_v44, %v93_v43 }
  0xa5   :  { %v131_v41 = vpop.xlane.xlu1 %130 }
  0xa6   :  { %v133_v45 = vmul.f32 %v132_v42, %v131_v41 }
  0xa8   :  { %v134_v50 = vadd.f32 %v133_v45, %v114_v47 }
  0xad   :  { %v151_v49 = vpop.xlane.xlu1 %150 }
  0xae   :  { %v153_v51 = vmul.f32 %v152_v46, %v151_v49 }
  0xb0   :  { %v154_v52 = vadd.f32 %v153_v51, %v134_v50 }
  0xb2   :  { %v155_v55 = vmul.f32 0.00390625, %v154_v52 }
  0xb4   :  { %v157_v57 = vadd.f32 %v156_v54, %v155_v55 }
  0xb6   :  { %v159_v60 = vmul.f32 %v158_v56, %v157_v57 }
  0xb8   :  { %v161_v62 = vadd.f32 %v160_v59, %v159_v60 }
  0xba   :  { %v168_v63 = vsel %vm167_vm2, %v161_v62, %v166_v61 }
  0xbb   :  { %172 = vst [vmem:[#allocation11 + $0x4] sm:$0x3] %v168_v63 }
  0xbc   :  { %183 = dma.vmem_to_hbm [thread:$0]  %s179_s16, 96, %s181_s19, [#allocation4]  }
  0xbd   :  { %300 = dma.done.wait [#allocation4], 96  }
  0xbe   :  { %301 = vsyncadd [#allocation4], 4294967200 }
  0xbf   :  { %188 = vsyncpa [#allocation3], 1 }
  0xc0   :  { %189 = vsyncpa [#allocation4], 1 }
  0xc1   :  { %190 = vsyncpa [#allocation5], 1 }
  0xc2   :  { %191 = vsyncpa [#allocation6], 1 }
  0xc3   :  { %192 = vsyncpa [#allocation10], 1 }

</bundles_post_ra>
